<compile_context>
chip_gen: v5e
topology: v5e:2x2
jax: 0.10.0
libtpu: 0.0.40
codegen_flags: <defaults>
</compile_context>

<pallas_src>
import jax
import jax.numpy as jnp
from jax.experimental import pallas as pl
from jax.experimental.pallas import tpu as pltpu


_LANES = 512          # lane-dense last dim (multiple of 128 -> unmasked vst)
_MAX_TILE_ROWS = 256  # rows per grid step (multiple of 8 sublanes); 512 KiB/block/stream
_PALLAS_MIN_N = 4096  # below this, XLA's fused scaled-add beats a kernel launch


def _round_up(v, m):
    return (v + m - 1) // m * m


def _make_msd_kernel(c_k, c_b):
    # c_k = -k/m, c_b = -b/m are Python floats closed over -> traced constants.
    def _msd_kernel(pos_ref, vel_ref, dpos_ref, dvel_ref):
        pos = pos_ref[...]
        vel = vel_ref[...]
        dpos_ref[...] = vel                    # d(position)/dt = velocity
        dvel_ref[...] = c_k * pos + c_b * vel  # d(velocity)/dt = -(k/m)x - (b/m)v
    return _msd_kernel


def mass_spring_damper_forward(t, x, m=1.0, k=1.0, b=0.5, use_pallas=None):
    """Equivalent of MassSpringDamper(m, k, b).forward(t, x).

    t is accepted (and ignored) to match the PyTorch signature.
    x: (2, N) float32. Returns dx: (2, N) float32.
    """
    del t
    x = jnp.asarray(x, dtype=jnp.float32)
    two, n = x.shape
    assert two == 2, "state dimension must be 2"

    c_k = float(-k / m)
    c_b = float(-b / m)

    if use_pallas is None:
        use_pallas = n >= _PALLAS_MIN_N
    if not use_pallas:
        # Tiny batches: Pallas dispatch + per-step overhead dwarfs the work.
        return jnp.stack([x[1], c_k * x[0] + c_b * x[1]])

    # Lane/sublane-dense layout for the batch axis.
    rows = pl.cdiv(n, _LANES)
    tile_rows = min(_MAX_TILE_ROWS, _round_up(rows, 8))
    rows_pad = _round_up(rows, tile_rows)      # no ragged edge blocks
    n_pad = rows_pad * _LANES

    pos = jnp.zeros((n_pad,), jnp.float32).at[:n].set(x[0]).reshape(rows_pad, _LANES)
    vel = jnp.zeros((n_pad,), jnp.float32).at[:n].set(x[1]).reshape(rows_pad, _LANES)

    blk = pl.BlockSpec((tile_rows, _LANES), lambda i: (i, 0))

    dpos, dvel = pl.pallas_call(
        _make_msd_kernel(c_k, c_b),
        out_shape=(
            jax.ShapeDtypeStruct((rows_pad, _LANES), jnp.float32),
            jax.ShapeDtypeStruct((rows_pad, _LANES), jnp.float32),
        ),
        grid=(rows_pad // tile_rows,),
        in_specs=[blk, blk],
        out_specs=(blk, blk),
        compiler_params=pltpu.CompilerParams(
            dimension_semantics=("parallel",),
        ),
        cost_estimate=pl.CostEstimate(
            flops=3 * n_pad, transcendentals=0, bytes_accessed=16 * n_pad
        ),
    )(pos, vel)

    return jnp.stack([dpos.reshape(-1)[:n], dvel.reshape(-1)[:n]])


if __name__ == "__main__":
    key = jax.random.PRNGKey(0)
    m_, k_, b_ = 1.0, 1.0, 0.5
    A_ref = jnp.array([[0.0, 1.0], [-k_ / m_, -b_ / m_]], dtype=jnp.float32)
    t = jnp.float32(0.0)  # unused, present for signature parity

    # Small batch (N=8): auto-dispatch takes the fused plain-JAX fallback.
    x_small = jax.random.normal(key, (2, 8), dtype=jnp.float32)
    dx_small = jax.block_until_ready(
        mass_spring_damper_forward(t, x_small, m_, k_, b_))
    assert dx_small.shape == (2, 8)
    assert jnp.allclose(dx_small, A_ref @ x_small, atol=1e-6, rtol=1e-6)

    # Modest batch forced through the Pallas path; 2065 is not a multiple of
    # the 512-lane layout, so this also exercises the padding/slicing logic.
    n_big = 2065
    x_big = jax.random.normal(jax.random.fold_in(key, 1), (2, n_big),
                              dtype=jnp.float32)
    dx_big = jax.block_until_ready(
        mass_spring_damper_forward(t, x_big, m_, k_, b_, use_pallas=True))
    assert dx_big.shape == (2, n_big)
    assert jnp.allclose(dx_big, A_ref @ x_big, atol=1e-5, rtol=1e-5)

    print("KERNEL_OK")
</pallas_src>

<mosaic_0001>
module attributes {stable_mosaic.version = 11 : i64} {
  func.func @_msd_kernel(%arg0: i32, %arg1: memref<8x512xf32, #tpu.memory_space<vmem>>, %arg2: memref<8x512xf32, #tpu.memory_space<vmem>>, %arg3: memref<8x512xf32, #tpu.memory_space<vmem>>, %arg4: memref<8x512xf32, #tpu.memory_space<vmem>>) attributes {dimension_semantics = [#tpu.dimension_semantics<parallel>], iteration_bounds = array<i64: 1>, scalar_prefetch = 0 : i64, scratch_operands = 0 : i64, tpu.core_type = #tpu.core_type<tc>, window_params = [{transform_indices = @transform_0, window_bounds = array<i64: 8, 512>}, {transform_indices = @transform_1, window_bounds = array<i64: 8, 512>}, {transform_indices = @transform_2, window_bounds = array<i64: 8, 512>}, {transform_indices = @transform_3, window_bounds = array<i64: 8, 512>}]} {
    %c0 = arith.constant 0 : index
    %c0_0 = arith.constant 0 : index
    %0 = vector.load %arg1[%c0, %c0_0] : memref<8x512xf32, #tpu.memory_space<vmem>>, vector<8x512xf32>
    %c0_1 = arith.constant 0 : index
    %c0_2 = arith.constant 0 : index
    %1 = vector.load %arg2[%c0_1, %c0_2] : memref<8x512xf32, #tpu.memory_space<vmem>>, vector<8x512xf32>
    %c0_3 = arith.constant 0 : index
    %c0_4 = arith.constant 0 : index
    %2 = vector.load %arg3[%c0_3, %c0_4] : memref<8x512xf32, #tpu.memory_space<vmem>>, vector<8x512xf32>
    tpu.vector_store %arg3[%c0_3, %c0_4], %1 {strides = array<i32>} : memref<8x512xf32, #tpu.memory_space<vmem>>, vector<8x512xf32>,
    %cst = arith.constant -1.000000e+00 : f32
    %3 = vector.broadcast %cst : f32 to vector<8x512xf32>
    %4 = arith.mulf %3, %0 : vector<8x512xf32>
    %cst_5 = arith.constant -5.000000e-01 : f32
    %5 = vector.broadcast %cst_5 : f32 to vector<8x512xf32>
    %6 = arith.mulf %5, %1 : vector<8x512xf32>
    %7 = arith.addf %4, %6 : vector<8x512xf32>
    %c0_6 = arith.constant 0 : index
    %c0_7 = arith.constant 0 : index
    %8 = vector.load %arg4[%c0_6, %c0_7] : memref<8x512xf32, #tpu.memory_space<vmem>>, vector<8x512xf32>
    tpu.vector_store %arg4[%c0_6, %c0_7], %7 {strides = array<i32>} : memref<8x512xf32, #tpu.memory_space<vmem>>, vector<8x512xf32>,
    return
  }
  func.func @transform_0(%arg0: i32) -> (i32, i32) {
    %c0_i32 = arith.constant 0 : i32
    %c0_i32_0 = arith.constant 0 : i32
    return %arg0, %c0_i32 : i32, i32
  }
  func.func @transform_1(%arg0: i32) -> (i32, i32) {
    %c0_i32 = arith.constant 0 : i32
    %c0_i32_0 = arith.constant 0 : i32
    return %arg0, %c0_i32 : i32, i32
  }
  func.func @transform_2(%arg0: i32) -> (i32, i32) {
    %c0_i32 = arith.constant 0 : i32
    %c0_i32_0 = arith.constant 0 : i32
    return %arg0, %c0_i32 : i32, i32
  }
  func.func @transform_3(%arg0: i32) -> (i32, i32) {
    %c0_i32 = arith.constant 0 : i32
    %c0_i32_0 = arith.constant 0 : i32
    return %arg0, %c0_i32 : i32, i32
  }
}

</mosaic_0001>

<bundles_post_ra>
// kernel: tpu_custom_call.1
= control target key start
LH: loop header
LB: loop body
LE: loop exit
PB: predicated region body
PF: predicated region fallthrough
CT: control target
= control target key end

     0   :  { %9 = vsyncpa [#allocation3], 0  ;;  %s252_s0 = inlined_call_operand.hbm [shape: f32[8,512], index: 0, kind: input, shape index: {}]   ;;  %s253_s1 = inlined_call_operand.hbm [shape: f32[8,512], index: 1, kind: input, shape index: {}]   ;;  %s254_s2 = inlined_call_operand.hbm [shape: f32[8,512], index: 2, kind: output, shape index: {0}]   ;;  %s255_s3 = inlined_call_operand.hbm [shape: f32[8,512], index: 3, kind: output, shape index: {1}]  }
   0x1   :  { %10 = vsyncpa [#allocation6], 0 }
   0x2   :  { %11 = vsyncpa [#allocation4], 0 }
   0x3   :  { %12 = vsyncpa [#allocation9], 0  ;;  %s18_s14 = sshll.u32 %s252_s0, 4  ;;  %s213_s15 = smov [#allocation2]   ;;  %s19_s14 = int_to_ptr.hbm [resolvable:$true] %s18_s14 }
   0x4   :  { %s20_s16 = sshll.u32 %s213_s15, 4  ;;  %s29_s19 = sshll.u32 %s253_s1, 4  ;;  %s21_s16 = int_to_ptr.vmem [resolvable:$true] %s20_s16  ;;  %s30_s19 = int_to_ptr.hbm [resolvable:$true] %s29_s19 }
   0x5   :  { %23 = dma.hbm_to_vmem [thread:$0]  %s19_s14, 512, %s21_s16, [#allocation3]  }
   0x6   :  { %s214_s20 = smov [#allocation5]  }
   0x7   :  { %s31_s21 = sshll.u32 %s214_s20, 4  ;;  %s32_s21 = int_to_ptr.vmem [resolvable:$true] %s31_s21 }
   0x8   :  { %34 = dma.hbm_to_vmem [thread:$0]  %s30_s19, 512, %s32_s21, [#allocation6]  }
   0x9   :  { %205 = dma.done.wait [#allocation3], 512  }
   0xa   :  { %206 = vsyncadd [#allocation3], 4294966784 }
   0xb   :  { %207 = dma.done.wait [#allocation6], 512  }
   0xc   :  { %208 = vsyncadd [#allocation6], 4294966784  ;;  %s215_s22 = smov [#allocation7]   ;;  %s78_s25 = sshll.u32 %s254_s2, 4  ;;  %v47_v0 = vld [vmem:[#allocation5] sm:$0xff]  ;;  %v48_v1 = vld [vmem:[#allocation5 + $0x8] sm:$0xff]  ;;  %s79_s25 = int_to_ptr.hbm [resolvable:$true] %s78_s25 }
   0xd   :  { %s243_s0 = sshll.u32 %s215_s22, 4  ;;  %v49_v2 = vld [vmem:[#allocation5 + $0x10] sm:$0xff]  ;;  %51 = vst [vmem:[#allocation7] sm:$0xff] %v47_v0  ;;  %v59_v3 = vmul.f32 -0.5, %v47_v0  ;;  %v60_v4 = vmul.f32 -0.5, %v48_v1  ;;  %v50_v6 = vld [vmem:[#allocation5 + $0x18] sm:$0xff]  ;;  %s77_s0 = int_to_ptr.vmem [resolvable:$true] %s243_s0 }
   0xe   :  { %v61_v5 = vmul.f32 -0.5, %v49_v2  ;;  %v43_v7 = vld [vmem:[#allocation2] sm:$0xff]  ;;  %52 = vst [vmem:[#allocation7 + $0x8] sm:$0xff] %v48_v1  ;;  %v62_v8 = vmul.f32 -0.5, %v50_v6  ;;  %v44_v10 = vld [vmem:[#allocation2 + $0x8] sm:$0xff]  ;;  %v45_v11 = vld [vmem:[#allocation2 + $0x10] sm:$0xff] }
   0xf   :  { %v55_v9 = vmul.f32 -1.0, %v43_v7  ;;  %v46_v12 = vld [vmem:[#allocation2 + $0x18] sm:$0xff]  ;;  %53 = vst [vmem:[#allocation7 + $0x10] sm:$0xff] %v49_v2  ;;  %v56_v13 = vmul.f32 -1.0, %v44_v10  ;;  %v57_v14 = vmul.f32 -1.0, %v45_v11  ;;  %s216_s1 = smov [#allocation8]  }
  0x10   :  { %v58_v15 = vmul.f32 -1.0, %v46_v12  ;;  %54 = vst [vmem:[#allocation7 + $0x18] sm:$0xff] %v50_v6  ;;  %s87_s2 = sshll.u32 %s216_s1, 4  ;;  %s89_s28 = sshll.u32 %s255_s3, 4  ;;  %s88_s2 = int_to_ptr.vmem [resolvable:$true] %s87_s2  ;;  %s90_s28 = int_to_ptr.hbm [resolvable:$true] %s89_s28 }
  0x11   :  { %v63_v16 = vadd.f32 %v59_v3, %v55_v9  ;;  %v64_v17 = vadd.f32 %v60_v4, %v56_v13  ;;  %v65_v18 = vadd.f32 %v61_v5, %v57_v14  ;;  %81 = dma.vmem_to_hbm [thread:$0]  %s77_s0, 512, %s79_s25, [#allocation4]  }
  0x12   :  { %v66_v19 = vadd.f32 %v62_v8, %v58_v15 }
  0x13   :  { %67 = vst [vmem:[#allocation8] sm:$0xff] %v63_v16 }
  0x14   :  { %68 = vst [vmem:[#allocation8 + $0x8] sm:$0xff] %v64_v17 }
  0x15   :  { %69 = vst [vmem:[#allocation8 + $0x10] sm:$0xff] %v65_v18 }
  0x16   :  { %70 = vst [vmem:[#allocation8 + $0x18] sm:$0xff] %v66_v19 }
  0x17   :  { %92 = dma.vmem_to_hbm [thread:$0]  %s88_s2, 512, %s90_s28, [#allocation9]  }
  0x18   :  { %209 = dma.done.wait [#allocation4], 512  }
  0x19   :  { %210 = vsyncadd [#allocation4], 4294966784 }
  0x1a   :  { %211 = dma.done.wait [#allocation9], 512  }
  0x1b   :  { %212 = vsyncadd [#allocation9], 4294966784 }
  0x1c   :  { %101 = vsyncpa [#allocation3], 1 }
  0x1d   :  { %102 = vsyncpa [#allocation6], 1 }
  0x1e   :  { %103 = vsyncpa [#allocation4], 1 }
  0x1f   :  { %104 = vsyncpa [#allocation9], 1 }

</bundles_post_ra>
